<compile_context>
chip_gen: v5e
topology: v5e:2x2
jax: 0.10.0
libtpu: 0.0.40
codegen_flags: <defaults>
</compile_context>

<pallas_src>
import functools

import jax
import jax.numpy as jnp
from jax.experimental import pallas as pl
from jax.experimental.pallas import tpu as pltpu


def _layernorm_kernel(x_ref, w_ref, b_ref, o_ref, *, d_model, epsilon):
    x = x_ref[...].astype(jnp.float32)                       # (TM, D)

    # Single-pass statistics: both reductions issue independently on the XLU.
    s1 = jnp.sum(x, axis=-1, keepdims=True)                  # (TM, 1)
    s2 = jnp.sum(x * x, axis=-1, keepdims=True)              # (TM, 1)

    inv_d = jnp.float32(1.0 / d_model)
    mean = s1 * inv_d                                        # (TM, 1)
    # Unbiased variance (torch.std default, divide by N-1).
    var = (s2 - jnp.float32(d_model) * mean * mean) * jnp.float32(1.0 / (d_model - 1))
    var = jnp.maximum(var, 0.0)                              # guard cancellation negatives
    std = jnp.sqrt(var)                                      # (TM, 1)

    # Reciprocal only on the (TM,1) column; the full (TM,D) tile gets a cheap multiply.
    inv = pl.reciprocal(std + jnp.float32(epsilon), approx=False)

    w = w_ref[...].astype(jnp.float32)                       # (1, D)
    b = b_ref[...].astype(jnp.float32)                       # (1, D)
    y = (x - mean) * inv * w + b
    o_ref[...] = y.astype(o_ref.dtype)


def _pick_tile_rows(rows, d_model, itemsize, target_tile_bytes=4 << 20, max_rows=4096):
    """Pick a row tile: dtype-aware sublane packing, ~target_tile_bytes per tile."""
    pack = {4: 8, 2: 16, 1: 32}.get(itemsize, 8)
    bytes_per_row = max(d_model * itemsize, 1)
    tm = max(target_tile_bytes // bytes_per_row, 1)
    tm = max((tm // pack) * pack, pack)                      # multiple of sublane packing
    tm = min(tm, max_rows)
    rows_padded = ((rows + pack - 1) // pack) * pack
    tm = min(tm, rows_padded)                                # never bigger than needed
    return tm


def layer_norm_pallas(x, w_ln, b_ln, epsilon=1e-4, use_ln=True):
    """LayerNorm over the last axis of x (any leading shape)."""
    if not use_ln:
        return x

    d_model = x.shape[-1]
    lead_shape = x.shape[:-1]
    rows = 1
    for s in lead_shape:
        rows *= s
    x2d = x.reshape(rows, d_model)

    tm = _pick_tile_rows(rows, d_model, x.dtype.itemsize)
    grid = pl.cdiv(rows, tm)                                 # partial last block is fine

    w2d = w_ln.reshape(1, d_model)
    b2d = b_ln.reshape(1, d_model)

    # VMEM budget: double-buffered input + output tiles plus compiler slack,
    # clamped to stay inside v7x's 64 MiB physical VMEM.
    tile_in_bytes = tm * d_model * x.dtype.itemsize
    tile_out_bytes = tm * d_model * x.dtype.itemsize
    vmem_limit = 2 * tile_in_bytes + 2 * tile_out_bytes + (16 << 20)
    vmem_limit = int(min(max(vmem_limit, 32 << 20), 48 << 20))

    kernel = functools.partial(_layernorm_kernel, d_model=d_model, epsilon=epsilon)

    out2d = pl.pallas_call(
        kernel,
        out_shape=jax.ShapeDtypeStruct((rows, d_model), x.dtype),
        grid_spec=pltpu.PrefetchScalarGridSpec(
            num_scalar_prefetch=0,
            grid=(grid,),
            in_specs=[
                pl.BlockSpec((tm, d_model), lambda i: (i, 0)),
                pl.BlockSpec((1, d_model), lambda i: (0, 0)),
                pl.BlockSpec((1, d_model), lambda i: (0, 0)),
            ],
            out_specs=pl.BlockSpec((tm, d_model), lambda i: (i, 0)),
        ),
        compiler_params=pltpu.CompilerParams(
            dimension_semantics=("parallel",),
            vmem_limit_bytes=vmem_limit,
        ),
    )(x2d, w2d, b2d)

    return out2d.reshape(*lead_shape, d_model)


if __name__ == "__main__":
    key = jax.random.PRNGKey(0)
    batch, seq, d_model = 2, 8, 32
    epsilon = 1e-4

    x = jax.random.normal(key, (batch, seq, d_model), dtype=jnp.float32)

    # nn.Parameter(ones) / nn.Parameter(zeros)
    w_ln = jnp.ones((d_model,), dtype=jnp.float32)
    b_ln = jnp.zeros((d_model,), dtype=jnp.float32)

    out = layer_norm_pallas(x, w_ln, b_ln, epsilon=epsilon, use_ln=True)
    out = jax.block_until_ready(out)

    # Pure-JAX reference (unbiased std, epsilon added outside sqrt -- matches torch module)
    mean = jnp.mean(x, axis=-1, keepdims=True)
    xc = x - mean
    std = jnp.sqrt(jnp.sum(xc * xc, axis=-1, keepdims=True) / (d_model - 1))
    ref = xc / (std + epsilon) * w_ln + b_ln

    assert out.shape == x.shape and out.dtype == x.dtype
    assert jnp.allclose(out, ref, atol=1e-4, rtol=1e-4)

    print("KERNEL_OK")
</pallas_src>

<mosaic_0001>
module attributes {stable_mosaic.version = 11 : i64} {
  func.func @_layernorm_kernel(%arg0: i32, %arg1: memref<16x32xf32, #tpu.memory_space<vmem>>, %arg2: memref<1x32xf32, #tpu.memory_space<vmem>>, %arg3: memref<1x32xf32, #tpu.memory_space<vmem>>, %arg4: memref<16x32xf32, #tpu.memory_space<vmem>>) attributes {dimension_semantics = [#tpu.dimension_semantics<parallel>], iteration_bounds = array<i64: 1>, scalar_prefetch = 0 : i64, scratch_operands = 0 : i64, tpu.core_type = #tpu.core_type<tc>, window_params = [{transform_indices = @transform_0, window_bounds = array<i64: 16, 32>}, {pipeline_mode = #tpu.pipeline_mode<synchronous>, transform_indices = @transform_1, window_bounds = array<i64: 1, 32>}, {pipeline_mode = #tpu.pipeline_mode<synchronous>, transform_indices = @transform_2, window_bounds = array<i64: 1, 32>}, {transform_indices = @transform_3, window_bounds = array<i64: 16, 32>}]} {
    %c0 = arith.constant 0 : index
    %c0_0 = arith.constant 0 : index
    %0 = vector.load %arg1[%c0, %c0_0] : memref<16x32xf32, #tpu.memory_space<vmem>>, vector<16x32xf32>
    %cst = arith.constant dense<0.000000e+00> : vector<16xf32>
    %1 = vector.multi_reduction <add>, %0, %cst [1] : vector<16x32xf32> to vector<16xf32>
    %2 = vector.shape_cast %1 : vector<16xf32> to vector<16x1xf32>
    %3 = arith.mulf %0, %0 : vector<16x32xf32>
    %cst_1 = arith.constant dense<0.000000e+00> : vector<16xf32>
    %4 = vector.multi_reduction <add>, %3, %cst_1 [1] : vector<16x32xf32> to vector<16xf32>
    %5 = vector.shape_cast %4 : vector<16xf32> to vector<16x1xf32>
    %cst_2 = arith.constant 3.125000e-02 : f32
    %6 = vector.broadcast %cst_2 : f32 to vector<16x1xf32>
    %7 = arith.mulf %2, %6 : vector<16x1xf32>
    %cst_3 = arith.constant 3.200000e+01 : f32
    %8 = vector.broadcast %cst_3 : f32 to vector<16x1xf32>
    %9 = arith.mulf %8, %7 : vector<16x1xf32>
    %10 = arith.mulf %9, %7 : vector<16x1xf32>
    %11 = arith.subf %5, %10 : vector<16x1xf32>
    %cst_4 = arith.constant 0.0322580636 : f32
    %12 = vector.broadcast %cst_4 : f32 to vector<16x1xf32>
    %13 = arith.mulf %11, %12 : vector<16x1xf32>
    %cst_5 = arith.constant 0.000000e+00 : f32
    %14 = vector.broadcast %cst_5 : f32 to vector<16x1xf32>
    %15 = arith.maximumf %13, %14 : vector<16x1xf32>
    %16 = math.sqrt %15 : vector<16x1xf32>
    %cst_6 = arith.constant 9.99999974E-5 : f32
    %17 = vector.broadcast %cst_6 : f32 to vector<16x1xf32>
    %18 = arith.addf %16, %17 : vector<16x1xf32>
    %19 = tpu.reciprocal %18 : vector<16x1xf32> -> vector<16x1xf32>
    %c0_7 = arith.constant 0 : index
    %c0_8 = arith.constant 0 : index
    %20 = vector.load %arg2[%c0_7, %c0_8] : memref<1x32xf32, #tpu.memory_space<vmem>>, vector<1x32xf32>
    %c0_9 = arith.constant 0 : index
    %c0_10 = arith.constant 0 : index
    %21 = vector.load %arg3[%c0_9, %c0_10] : memref<1x32xf32, #tpu.memory_space<vmem>>, vector<1x32xf32>
    %22 = vector.broadcast %7 : vector<16x1xf32> to vector<16x32xf32>
    %23 = arith.subf %0, %22 : vector<16x32xf32>
    %24 = vector.broadcast %19 : vector<16x1xf32> to vector<16x32xf32>
    %25 = arith.mulf %23, %24 : vector<16x32xf32>
    %26 = vector.broadcast %20 : vector<1x32xf32> to vector<16x32xf32>
    %27 = arith.mulf %25, %26 : vector<16x32xf32>
    %28 = vector.broadcast %21 : vector<1x32xf32> to vector<16x32xf32>
    %29 = arith.addf %27, %28 : vector<16x32xf32>
    %c0_11 = arith.constant 0 : index
    %c0_12 = arith.constant 0 : index
    %30 = vector.load %arg4[%c0_11, %c0_12] : memref<16x32xf32, #tpu.memory_space<vmem>>, vector<16x32xf32>
    tpu.vector_store %arg4[%c0_11, %c0_12], %29 {strides = array<i32>} : memref<16x32xf32, #tpu.memory_space<vmem>>, vector<16x32xf32>,
    return
  }
  func.func @transform_0(%arg0: i32) -> (i32, i32) {
    %c0_i32 = arith.constant 0 : i32
    %c0_i32_0 = arith.constant 0 : i32
    return %arg0, %c0_i32 : i32, i32
  }
  func.func @transform_1(%arg0: i32) -> (i32, i32) {
    %c0_i32 = arith.constant 0 : i32
    %c0_i32_0 = arith.constant 0 : i32
    %c0_i32_1 = arith.constant 0 : i32
    return %c0_i32, %c0_i32_0 : i32, i32
  }
  func.func @transform_2(%arg0: i32) -> (i32, i32) {
    %c0_i32 = arith.constant 0 : i32
    %c0_i32_0 = arith.constant 0 : i32
    %c0_i32_1 = arith.constant 0 : i32
    return %c0_i32, %c0_i32_0 : i32, i32
  }
  func.func @transform_3(%arg0: i32) -> (i32, i32) {
    %c0_i32 = arith.constant 0 : i32
    %c0_i32_0 = arith.constant 0 : i32
    return %arg0, %c0_i32 : i32, i32
  }
}

</mosaic_0001>

<bundles_post_ra>
// kernel: tpu_custom_call.1
= control target key start
LH: loop header
LB: loop body
LE: loop exit
PB: predicated region body
PF: predicated region fallthrough
CT: control target
= control target key end

     0   :  { %8 = vsyncpa [#allocation3], 0  ;;  %s330_s0 = inlined_call_operand.hbm [shape: f32[16,32], index: 0, kind: input, shape index: {}]   ;;  %s331_s1 = inlined_call_operand.hbm [shape: f32[1,32], index: 1, kind: input, shape index: {}]   ;;  %s332_s2 = inlined_call_operand.vmem [shape: f32[1,32], index: 2, kind: input, shape index: {}]   ;;  %s333_s3 = inlined_call_operand.hbm [shape: f32[16,32], index: 3, kind: output, shape index: {}]  }
   0x1   :  { %9 = vsyncpa [#allocation6], 0 }
   0x2   :  { %10 = vsyncpa [#allocation4], 0  ;;  %s15_s14 = sshll.u32 %s330_s0, 4  ;;  %s259_s15 = smov [#allocation2]   ;;  %s16_s14 = int_to_ptr.hbm [resolvable:$true] %s15_s14 }
   0x3   :  { %s17_s16 = sshll.u32 %s259_s15, 4  ;;  %s29_s19 = sshll.u32 %s331_s1, 4  ;;  %s18_s16 = int_to_ptr.vmem [resolvable:$true] %s17_s16  ;;  %s30_s19 = int_to_ptr.hbm [resolvable:$true] %s29_s19 }
   0x4   :  { %s260_s20 = smov 128   ;;  %s261_s21 = smov 8  }
   0x5   :  { %23 = dma.hbm_to_vmem [thread:$0]  %s16_s14, 256, %s18_s16, [#allocation3], %s260_s20, %s260_s20, %s261_s21  }
   0x6   :  { %s262_s22 = smov [#allocation5]  }
   0x7   :  { %s31_s23 = sshll.u32 %s262_s22, 4  ;;  %s32_s23 = int_to_ptr.vmem [resolvable:$true] %s31_s23 }
   0x8   :  { %34 = dma.hbm_to_vmem [thread:$0]  %s30_s19, 16, %s32_s23, [#allocation6]  }
   0x9   :  { %253 = dma.done.wait [#allocation3], 256  }
   0xa   :  { %254 = vsyncadd [#allocation3], 4294967040 }
   0xb   :  { %255 = dma.done.wait [#allocation6], 16  }
   0xc   :  { %256 = vsyncadd [#allocation6], 4294967280  ;;  %vm47_vm0 = vcmask 261120   ;;  %v293_v0 = vld [vmem:[#allocation2] sm:$0xff]  ;;  %v300_v4 = vld [vmem:[#allocation2 + $0x8] sm:$0xff]  ;;  %s152_s27 = sshll.u32 %s333_s3, 4  ;;  %s153_s27 = int_to_ptr.hbm [resolvable:$true] %s152_s27 }
   0xd   :  { %v48_v1 = vsel %vm47_vm0, %v293_v0, 0.0  ;;  %v54_v2 = vmul.f32 %v293_v0, %v293_v0  ;;  %v55_v5 = vmul.f32 %v300_v4, %v300_v4  ;;  %v51_v6 = vsel %vm47_vm0, %v300_v4, 0.0  ;;  %v171_v57 = vld [vmem:[#allocation5] ss:$0 sm:$0xff]  ;;  %v172_v61 = vld [vmem:[%s332_s2] ss:$0 sm:$0xff] }
   0xe   :  { %49 = vadd.xlane.f32.xlu0 %v48_v1  ;;  %s263_s2 = smov [#allocation7]  }
   0xf   :  { %v56_v3 = vsel %vm47_vm0, %v54_v2, 0.0  ;;  %v59_v7 = vsel %vm47_vm0, %v55_v5, 0.0  ;;  %s150_s24 = sshll.u32 %s263_s2, 4  ;;  %s151_s24 = int_to_ptr.vmem [resolvable:$true] %s150_s24 }
  0x10   :  { %57 = vadd.xlane.f32.xlu1 %v56_v3 }
  0x16   :  { %52 = vadd.xlane.f32.xlu0 %v51_v6 }
  0x18   :  { %60 = vadd.xlane.f32.xlu1 %v59_v7 }
  0x81   :  { %v50_v8 = vpop.xlane.xlu0 %49 }
  0x82   :  { %v307_v9 = vmul.f32 0.03125, %v50_v8 }
  0x83   :  { %v58_v10 = vpop.xlane.xlu1 %57 }
  0x84   :  { %v64_v11 = vmul.f32 32.0, %v307_v9  ;;  %v130_v55 = vsub.f32 %v293_v0, %v307_v9 }
  0x86   :  { %v66_v12 = vmul.f32 %v64_v11, %v307_v9 }
  0x88   :  { %v68_v13 = vsub.f32 %v58_v10, %v66_v12 }
  0x89   :  { %v53_v14 = vpop.xlane.xlu0 %52 }
  0x8a   :  { %v70_v15 = vmul.f32 0.032258064, %v68_v13  ;;  %v311_v16 = vmul.f32 0.03125, %v53_v14 }
  0x8b   :  { %v61_v19 = vpop.xlane.xlu1 %60 }
  0x8c   :  { %v72_v17 = vmax.f32 %v70_v15, 0.0  ;;  %v65_v18 = vmul.f32 32.0, %v311_v16  ;;  %v131_v7 = vsub.f32 %v300_v4, %v311_v16 }
  0x8e   :  { %173 = vrsqrt.f32 %v72_v17  ;;  %v67_v20 = vmul.f32 %v65_v18, %v311_v16  ;;  %vm81_vm1 = vcmp.eq.f32.partialorder %v72_v17, inf  ;;  %v84_v33 = vand.u32 2147483648, %v72_v17 }
  0x8f   :  { %vm83_vm2 = vcmp.eq.f32.partialorder %v72_v17, 0.0 }
  0x90   :  { %v69_v21 = vsub.f32 %v61_v19, %v67_v20 }
  0x92   :  { %v71_v22 = vmul.f32 0.032258064, %v69_v21 }
  0x94   :  { %v174_v23 = vpop.eup %173  ;;  %v73_v25 = vmax.f32 %v71_v22, 0.0 }
  0x95   :  { %v75_v24 = vmul.f32 %v174_v23, %v72_v17 }
  0x96   :  { %175 = vrsqrt.f32 %v73_v25  ;;  %vm93_vm3 = vcmp.eq.f32.partialorder %v73_v25, inf  ;;  %v96_v42 = vand.u32 2147483648, %v73_v25  ;;  %vm95_vm4 = vcmp.eq.f32.partialorder %v73_v25, 0.0 }
  0x97   :  { %v76_v26 = vmul.f32 %v174_v23, %v75_v24 }
  0x99   :  { %v77_v27 = vmul.f32 0.5, %v76_v26 }
  0x9b   :  { %v78_v28 = vsub.f32 1.5, %v77_v27 }
  0x9c   :  { %v176_v29 = vpop.eup %175 }
  0x9d   :  { %v79_v30 = vmul.f32 %v174_v23, %v78_v28  ;;  %v87_v31 = vmul.f32 %v176_v29, %v73_v25 }
  0x9f   :  { %v80_v32 = vmul.f32 %v79_v30, %v72_v17  ;;  %v88_v34 = vmul.f32 %v176_v29, %v87_v31 }
  0xa1   :  { %v82_v35 = vsel %vm81_vm1, %v72_v17, %v80_v32  ;;  %v89_v37 = vmul.f32 0.5, %v88_v34 }
  0xa2   :  { %v85_v36 = vsel %vm83_vm2, %v84_v33, %v82_v35 }
  0xa3   :  { %v98_v38 = vadd.f32 0.0001, %v85_v36  ;;  %v90_v39 = vsub.f32 1.5, %v89_v37 }
  0xa5   :  { %177 = vrcp.f32 %v98_v38  ;;  %v91_v40 = vmul.f32 %v176_v29, %v90_v39  ;;  %v111_v49 = vand.u32 2147483648, %v98_v38  ;;  %v109_v51 = vand.u32 2147483647, %v98_v38 }
  0xa6   :  { %vm105_vm6 = vweird.f32 %v98_v38 }
  0xa7   :  { %v92_v41 = vmul.f32 %v91_v40, %v73_v25  ;;  %v112_v53 = vor.u32 1.1754944e-38, %v111_v49  ;;  %vm110_vm8 = vcmp.eq.f32.partialorder %v109_v51, 8.507059e+37 }
  0xa9   :  { %v94_v43 = vsel %vm93_vm3, %v73_v25, %v92_v41 }
  0xaa   :  { %v97_v45 = vsel %vm95_vm4, %v96_v42, %v94_v43 }
  0xab   :  { %v178_v44 = vpop.eup %177  ;;  %v99_v46 = vadd.f32 0.0001, %v97_v45 }
  0xac   :  { %v101_v47 = vmul.f32 %v178_v44, %v98_v38  ;;  %vm106_vm5 = vweird.f32 %v178_v44 }
  0xad   :  { %179 = vrcp.f32 %v99_v46  ;;  %vm107_vm7 = vmor %vm105_vm6, %vm106_vm5  ;;  %v125_v63 = vand.u32 2147483648, %v99_v46  ;;  %v123_v3 = vand.u32 2147483647, %v99_v46  ;;  %vm119_vm10 = vweird.f32 %v99_v46 }
  0xae   :  { %v102_v48 = vsub.f32 1.0, %v101_v47 }
  0xaf   :  { %v126_v0 = vor.u32 1.1754944e-38, %v125_v63  ;;  %vm124_vm12 = vcmp.eq.f32.partialorder %v123_v3, 8.507059e+37 }
  0xb0   :  { %v103_v50 = vmul.f32 %v178_v44, %v102_v48 }
  0xb2   :  { %v104_v52 = vadd.f32 %v178_v44, %v103_v50 }
  0xb3   :  { %v180_v54 = vpop.eup %179 }
  0xb4   :  { %v108_v56 = vsel %vm107_vm7, %v178_v44, %v104_v52  ;;  %v115_v59 = vmul.f32 %v180_v54, %v99_v46  ;;  %vm120_vm9 = vweird.f32 %v180_v54 }
  0xb5   :  { %v113_v58 = vsel %vm110_vm8, %v112_v53, %v108_v56  ;;  %vm121_vm11 = vmor %vm119_vm10, %vm120_vm9 }
  0xb6   :  { %v132_v60 = vmul.f32 %v130_v55, %v113_v58  ;;  %v116_v62 = vsub.f32 1.0, %v115_v59 }
  0xb8   :  { %v137_v1 = vmul.f32 %v171_v57, %v132_v60  ;;  %v117_v2 = vmul.f32 %v180_v54, %v116_v62 }
  0xba   :  { %v142_v5 = vadd.f32 %v172_v61, %v137_v1  ;;  %v118_v6 = vadd.f32 %v180_v54, %v117_v2 }
  0xbc   :  { %144 = vst.msk [vmem:[#allocation7] sm:$0xff] %vm47_vm0, %v142_v5  ;;  %v122_v8 = vsel %vm121_vm11, %v180_v54, %v118_v6 }
  0xbd   :  { %v127_v9 = vsel %vm124_vm12, %v126_v0, %v122_v8 }
  0xbe   :  { %v133_v10 = vmul.f32 %v131_v7, %v127_v9 }
  0xc0   :  { %v138_v11 = vmul.f32 %v171_v57, %v133_v10 }
  0xc2   :  { %v143_v12 = vadd.f32 %v172_v61, %v138_v11 }
  0xc4   :  { %145 = vst.msk [vmem:[#allocation7 + $0x8] sm:$0xff] %vm47_vm0, %v143_v12 }
  0xc5   :  { %158 = dma.vmem_to_hbm [thread:$0]  %s151_s24, 256, %s153_s27, [#allocation4], %s260_s20, %s260_s20, %s261_s21  }
  0xc6   :  { %257 = dma.done.wait [#allocation4], 256  }
  0xc7   :  { %258 = vsyncadd [#allocation4], 4294967040 }
  0xc8   :  { %163 = vsyncpa [#allocation3], 1 }
  0xc9   :  { %164 = vsyncpa [#allocation6], 1 }
  0xca   :  { %165 = vsyncpa [#allocation4], 1 }

</bundles_post_ra>
